<compile_context>
chip_gen: v7x
topology: tpu7x:2x2x1
jax: 0.10.0
libtpu: 0.0.40
codegen_flags: <defaults>
</compile_context>

<pallas_src>
import functools

import numpy as np
import jax
import jax.numpy as jnp
from jax.experimental import pallas as pl
from jax.experimental.pallas import tpu as pltpu


# ----------------------------------------------------------------------------
# helpers
# ----------------------------------------------------------------------------
def _round_up(x, m):
    return ((x + m - 1) // m) * m


def _pick_tile(m, quantum, cap, min_blocks=4):
    # Row tile: big enough to amortize the ~0.35us per-grid-step overhead, but
    # split into >= min_blocks blocks so v7x megacore can shard the "parallel"
    # axis (no-op on v5e/v6e).  Always a multiple of `quantum` (sublane align),
    # never (much) larger than the problem.
    m = max(int(m), 1)
    target = _round_up(pl.cdiv(m, min_blocks), quantum)
    return max(quantum, min(cap, target, _round_up(m, quantum)))


# ----------------------------------------------------------------------------
# Pallas kernels
# ----------------------------------------------------------------------------
def _conv0_pack4_kernel(x_ref, w_ref, b_ref, res_ref, o_ref):
    # conv_list[0]: relu(x @ (W * bn_scale) + bn_bias) + residual, in a
    # lane-dense "pack 4 rows" layout:
    #   x_ref  : (tm4, 32)  bf16  -- 4 original (row, 8) inputs per kernel row
    #   w_ref  : (32, 128)  bf16  -- block-diag(4 x BN-folded W(8, 32))
    #   b_ref  : (1, 128)   f32   -- bn_bias tiled 4x (lane-dense)
    #   res_ref: (tm4, 128) bf16  -- 4 original (row, 32) residual rows per row
    #   o_ref  : (tm4, 128) bf16
    # The block-diagonal weight makes the MXU emit the result already
    # lane-dense, so the epilogue and the store use full 128-lane vregs
    # (no masked vst).  MXU flops are 4x the logical minimum, which is free:
    # the kernel is ~2 FLOP/B memory-bound on every TPU generation.
    y = jnp.dot(x_ref[...], w_ref[...], preferred_element_type=jnp.float32)
    y = jnp.maximum(y + b_ref[...], 0.0)                      # bias + ReLU (f32)
    o_ref[...] = (y + res_ref[...].astype(jnp.float32)).astype(o_ref.dtype)


def _bin_shuffle_kernel(x_ref, w1_ref, b1_ref, w2_ref, b2_ref, o_ref):
    # bin_shuffle: relu(x@W1 + b1) -> relu(.@W2 + b2), BN folded into W/b,
    # fused per row tile.  bf16 MXU operands, f32 accumulation/epilogue,
    # bf16 output stream.
    h = jnp.dot(x_ref[...], w1_ref[...], preferred_element_type=jnp.float32)
    h = jnp.maximum(h + b1_ref[...], 0.0)
    y = jnp.dot(h.astype(w2_ref.dtype), w2_ref[...],
                preferred_element_type=jnp.float32)
    o_ref[...] = jnp.maximum(y + b2_ref[...], 0.0).astype(o_ref.dtype)


# ----------------------------------------------------------------------------
# Jitted wrappers (tile size static; pad/cast/reshape fuse with pallas_call)
# ----------------------------------------------------------------------------
@functools.partial(jax.jit, static_argnames=("tm4",))
def _conv0_call(x, w4, b4, residual, tm4):
    # x: (M, 8) f32, residual: (M, 32) f32 -> (M, 32) bf16
    M = x.shape[0]
    Mp = _round_up(M, 4)
    if Mp != M:  # pad so 4 consecutive rows pack into one 128-lane row
        x = jnp.pad(x, ((0, Mp - M), (0, 0)))
        residual = jnp.pad(residual, ((0, Mp - M), (0, 0)))
    M4 = Mp // 4
    xp = x.astype(jnp.bfloat16).reshape(M4, 32)          # contiguous repack
    rp = residual.astype(jnp.bfloat16).reshape(M4, 128)  # lane-dense residual

    grid = (pl.cdiv(M4, tm4),)
    flops = 2 * M4 * 32 * 128
    bytes_accessed = (M4 * 32 * 2 + 32 * 128 * 2 + 128 * 4
                      + M4 * 128 * 2 + M4 * 128 * 2)

    out = pl.pallas_call(
        _conv0_pack4_kernel,
        out_shape=jax.ShapeDtypeStruct((M4, 128), jnp.bfloat16),
        grid_spec=pltpu.PrefetchScalarGridSpec(
            num_scalar_prefetch=0,
            grid=grid,
            in_specs=[
                pl.BlockSpec((tm4, 32), lambda i: (i, 0)),
                pl.BlockSpec((32, 128), lambda i: (0, 0)),
                pl.BlockSpec((1, 128), lambda i: (0, 0)),
                pl.BlockSpec((tm4, 128), lambda i: (i, 0)),
            ],
            out_specs=pl.BlockSpec((tm4, 128), lambda i: (i, 0)),
        ),
        compiler_params=pltpu.CompilerParams(dimension_semantics=("parallel",)),
        cost_estimate=pl.CostEstimate(flops=flops, transcendentals=0,
                                      bytes_accessed=bytes_accessed),
    )(xp, w4, b4, rp)
    return out.reshape(Mp, 32)[:M]


def linear_bn_relu_residual_pallas(prep, x, residual, tm4_max=2048):
    x = jnp.asarray(x, jnp.float32)
    residual = jnp.asarray(residual, jnp.float32)
    M4 = _round_up(x.shape[0], 4) // 4
    tm4 = _pick_tile(M4, quantum=8, cap=tm4_max)          # <=8192 original rows
    return _conv0_call(x, prep["conv0_w4"], prep["conv0_b4"], residual, tm4=tm4)


@functools.partial(jax.jit, static_argnames=("tm",))
def _bin_shuffle_call(x, w1, b1, w2, b2, tm):
    M, K = x.shape
    H = w1.shape[1]
    N = w2.shape[1]
    xb = x.astype(jnp.bfloat16)
    grid = (pl.cdiv(M, tm),)
    flops = 2 * M * K * H + 2 * M * H * N
    bytes_accessed = (M * K * 2 + K * H * 2 + H * N * 2
                      + (H + N) * 4 + M * N * 2)
    return pl.pallas_call(
        _bin_shuffle_kernel,
        out_shape=jax.ShapeDtypeStruct((M, N), jnp.bfloat16),
        grid_spec=pltpu.PrefetchScalarGridSpec(
            num_scalar_prefetch=0,
            grid=grid,
            in_specs=[
                pl.BlockSpec((tm, K), lambda i: (i, 0)),
                pl.BlockSpec((K, H), lambda i: (0, 0)),
                pl.BlockSpec((1, H), lambda i: (0, 0)),
                pl.BlockSpec((H, N), lambda i: (0, 0)),
                pl.BlockSpec((1, N), lambda i: (0, 0)),
            ],
            out_specs=pl.BlockSpec((tm, N), lambda i: (i, 0)),
        ),
        compiler_params=pltpu.CompilerParams(dimension_semantics=("parallel",)),
        cost_estimate=pl.CostEstimate(flops=flops, transcendentals=0,
                                      bytes_accessed=bytes_accessed),
    )(xb, w1, b1, w2, b2)


def bin_shuffle_pallas(prep, x, tm_max=1024):
    x = jnp.asarray(x, jnp.float32)
    tm = _pick_tile(x.shape[0], quantum=8, cap=tm_max)
    return _bin_shuffle_call(x, prep["bs0_w1"], prep["bs0_b1"],
                             prep["bs0_w2"], prep["bs0_b2"], tm=tm)


# ----------------------------------------------------------------------------
# One-time parameter preparation (BN fold + bf16 cast + lane-dense packing)
# ----------------------------------------------------------------------------
def prepare_pallas_params(p):
    w0 = p["conv0_w"] * p["conv0_scale"][None, :]                         # (8, 32)
    conv0_w4 = jnp.kron(jnp.eye(4, dtype=w0.dtype), w0).astype(jnp.bfloat16)  # (32,128)
    conv0_b4 = jnp.tile(p["conv0_bias"], 4).reshape(1, 128).astype(jnp.float32)
    bs_w1 = (p["bs0_w1"] * p["bs0_s1"][None, :]).astype(jnp.bfloat16)     # (256,128)
    bs_b1 = p["bs0_b1"].reshape(1, -1).astype(jnp.float32)
    bs_w2 = (p["bs0_w2"] * p["bs0_s2"][None, :]).astype(jnp.bfloat16)     # (128, 32)
    bs_b2 = p["bs0_b2"].reshape(1, -1).astype(jnp.float32)
    prep = dict(conv0_w4=conv0_w4, conv0_b4=conv0_b4,
                bs0_w1=bs_w1, bs0_b1=bs_b1, bs0_w2=bs_w2, bs0_b2=bs_b2)
    return jax.block_until_ready(prep)


# ----------------------------------------------------------------------------
# Pure-numpy references for the two compute blocks (correctness check)
# ----------------------------------------------------------------------------
def make_refs(params):
    w0 = np.asarray(params["conv0_w"], np.float32)
    s0 = np.asarray(params["conv0_scale"], np.float32)
    b0 = np.asarray(params["conv0_bias"], np.float32)
    w1 = np.asarray(params["bs0_w1"], np.float32)
    s1 = np.asarray(params["bs0_s1"], np.float32)
    b1 = np.asarray(params["bs0_b1"], np.float32)
    w2 = np.asarray(params["bs0_w2"], np.float32)
    s2 = np.asarray(params["bs0_s2"], np.float32)
    b2 = np.asarray(params["bs0_b2"], np.float32)

    def linear_ref(x, residual):
        y = np.maximum(np.asarray(x, np.float32) @ w0 * s0 + b0, 0.0)
        return y + np.asarray(residual, np.float32)

    def bs_ref(x):
        h = np.maximum(np.asarray(x, np.float32) @ w1 * s1 + b1, 0.0)
        return np.maximum(h @ w2 * s2 + b2, 0.0)

    return linear_ref, bs_ref


# ----------------------------------------------------------------------------
# Zconv forward (downsample_level == 1 path: point_sum_subm -> dyn_voxelization
# -> binning -> bin_shuffle -> scatter-add into sparse features)
# ----------------------------------------------------------------------------
def zconv_forward(cfg, sparse_features, points_with_f_center, pillar_merge_coords,
                  linear_fn, bin_shuffle_fn):
    gx, gy, gz = cfg["grid_size"]
    scale_xy, scale_y = gx * gy, gy
    scale_xyz, scale_yz, scale_z = gx * gy * gz, gy * gz, gz
    num_bins = cfg["num_bins"]
    vs = np.asarray(cfg["voxel_size"], np.float32)
    pcr = np.asarray(cfg["point_cloud_range"], np.float32)

    feats = np.asarray(sparse_features, np.float32)
    points = np.asarray(points_with_f_center, np.float32)
    pmc = np.asarray(pillar_merge_coords)

    # ---- point_sum_subm ----
    order = np.argsort(pmc, kind="stable")
    points_sorted = points[order]
    _, inv = np.unique(pmc[order], return_inverse=True)
    sparse_gathered = feats[inv]
    points_feature = np.asarray(
        linear_fn(points_sorted[:, 1:], sparse_gathered)).astype(np.float32)
    pts = np.concatenate([points[:, :1], points[:, 4:]], axis=1)

    # ---- dyn_voxelization ----
    point_coords = np.floor((pts[:, 1:4] - pcr[0:3]) / vs).astype(np.int32)
    merge_coords = (pts[:, 0].astype(np.int32) * scale_xyz
                    + point_coords[:, 0] * scale_yz
                    + point_coords[:, 1] * scale_z
                    + point_coords[:, 2])
    unq_coords, unq_inv, unq_cnt = np.unique(merge_coords, return_inverse=True,
                                             return_counts=True)
    points_data = np.concatenate([pts[:, :4], points_feature], axis=-1)
    sums = np.zeros((unq_coords.shape[0], points_data.shape[1]), np.float32)
    np.add.at(sums, unq_inv, points_data)
    points_mean = sums / unq_cnt[:, None].astype(np.float32)
    uc = unq_coords.astype(np.int32)
    voxel_coords = np.stack([uc // scale_xyz, uc % scale_xyz // scale_yz,
                             uc % scale_yz // scale_z, uc % scale_z], axis=1)
    voxel_coords = voxel_coords[:, [0, 3, 2, 1]]  # (batch, z, y, x)

    # ---- binning ----
    v_feat_coords = (voxel_coords[:, 0] * scale_xy
                     + voxel_coords[:, 3] * scale_y
                     + voxel_coords[:, 2])
    unq2, unq_inv2, unq_cnt2 = np.unique(v_feat_coords, return_inverse=True,
                                         return_counts=True)
    src = np.zeros((unq2.shape[0], num_bins, points_mean.shape[1]), np.float32)
    src[unq_inv2, voxel_coords[:, 1]] = points_mean
    occupied_mask = unq_cnt2 >= 2

    if occupied_mask.sum() == 0:
        return feats

    src = src[occupied_mask]
    src = src[:, :, 4:]                      # drop bxyz
    n, p, c = src.shape
    src = src.reshape(n, p * c)
    out = np.asarray(bin_shuffle_fn(src)).astype(np.float32)

    new_feats = feats.copy()
    new_feats[occupied_mask] = new_feats[occupied_mask] + out
    return new_feats


# ----------------------------------------------------------------------------
# Deterministic parameter init (eval-mode BatchNorm, raw/unfolded)
# ----------------------------------------------------------------------------
def _init_bn(key, c, eps=1e-3):
    k1, k2, k3, k4 = jax.random.split(key, 4)
    gamma = jax.random.uniform(k1, (c,), jnp.float32, 0.5, 1.5)
    beta = jax.random.uniform(k2, (c,), jnp.float32, -0.1, 0.1)
    mean = jax.random.uniform(k3, (c,), jnp.float32, -0.1, 0.1)
    var = jax.random.uniform(k4, (c,), jnp.float32, 0.5, 1.5)
    scale = gamma / jnp.sqrt(var + eps)
    bias = beta - mean * scale
    return scale, bias


def build_params(key, num_bins, output_channel):
    out_c = output_channel
    inter_c = 32                          # encoder_level == 1 -> inter_channel = 32
    in_c = inter_c * num_bins             # bin_shuffle input (= 256)
    ks = jax.random.split(key, 6)
    conv0_w = jax.random.uniform(ks[0], (8, out_c), jnp.float32, -1.0, 1.0) / np.sqrt(8.0)
    conv0_scale, conv0_bias = _init_bn(ks[1], out_c)
    bs_w1 = jax.random.uniform(ks[2], (in_c, in_c // 2), jnp.float32, -1.0, 1.0) / np.sqrt(in_c)
    bs_s1, bs_b1 = _init_bn(ks[3], in_c // 2)
    bs_w2 = jax.random.uniform(ks[4], (in_c // 2, out_c), jnp.float32, -1.0, 1.0) / np.sqrt(in_c // 2)
    bs_s2, bs_b2 = _init_bn(ks[5], out_c)
    return dict(conv0_w=conv0_w, conv0_scale=conv0_scale, conv0_bias=conv0_bias,
                bs0_w1=bs_w1, bs0_s1=bs_s1, bs0_b1=bs_b1,
                bs0_w2=bs_w2, bs0_s2=bs_s2, bs0_b2=bs_b2)


# ----------------------------------------------------------------------------
# Main
# ----------------------------------------------------------------------------
if __name__ == "__main__":
    key = jax.random.PRNGKey(0)
    k_param, k_feat, k_pts, k_z = jax.random.split(key, 4)

    cfg = dict(grid_size=(4, 4, 8),
               voxel_size=(1.0, 1.0, 1.0),
               point_cloud_range=(0.0, 0.0, 0.0, 4.0, 4.0, 8.0),
               num_bins=8,
               output_channel=32)

    params = build_params(k_param, cfg["num_bins"], cfg["output_channel"])
    prep = prepare_pallas_params(params)            # one-time fold/cast/pack

    n_pts = 128
    n_pillars = cfg["grid_size"][0] * cfg["grid_size"][1]  # 16

    # Synthetic point cloud: every xy-pillar is touched so the unique-coord
    # count matches the sparse-feature row count (as the module assumes).
    pillar_ids = np.arange(n_pts) % n_pillars
    x_idx = pillar_ids // cfg["grid_size"][1]
    y_idx = pillar_ids % cfg["grid_size"][1]
    z_idx = np.array(jax.random.randint(k_z, (n_pts,), 0, cfg["grid_size"][2]))
    xyz = np.stack([x_idx, y_idx, z_idx], axis=1).astype(np.float32) + 0.5

    # np.array (not np.asarray) -> writable host copy of the jax array.
    points_with_f_center = np.array(
        jax.random.uniform(k_pts, (n_pts, 9), jnp.float32, -1.0, 1.0))
    points_with_f_center[:, 0] = 0.0        # batch index
    points_with_f_center[:, 4:7] = xyz      # x, y, z used by dyn_voxelization

    pillar_merge_coords = pillar_ids.astype(np.int32)
    sparse_features = np.array(
        jax.random.uniform(k_feat, (n_pillars, cfg["output_channel"]),
                           jnp.float32, -1.0, 1.0))

    pallas_linear = lambda x, res: linear_bn_relu_residual_pallas(prep, x, res)
    pallas_bs = lambda x: bin_shuffle_pallas(prep, x)
    ref_linear, ref_bs = make_refs(params)

    # Pallas forward
    out_pallas = zconv_forward(cfg, sparse_features, points_with_f_center,
                               pillar_merge_coords, pallas_linear, pallas_bs)
    out_pallas = jax.block_until_ready(jnp.asarray(out_pallas))

    # numpy reference forward (same glue, numpy matmuls, unfolded BN, f32)
    out_ref = zconv_forward(cfg, sparse_features, points_with_f_center,
                            pillar_merge_coords, ref_linear, ref_bs)

    assert out_pallas.shape == (n_pillars, cfg["output_channel"])
    assert np.allclose(np.asarray(out_pallas), np.asarray(out_ref),
                       rtol=5e-2, atol=5e-2), \
        "Pallas output mismatch vs numpy reference"

    print("KERNEL_OK")
</pallas_src>

<mosaic_0001>
module attributes {stable_mosaic.version = 11 : i64} {
  func.func @_conv0_pack4_kernel(%arg0: i32, %arg1: memref<8x32xbf16, #tpu.memory_space<vmem>>, %arg2: memref<32x128xbf16, #tpu.memory_space<vmem>>, %arg3: memref<1x128xf32, #tpu.memory_space<vmem>>, %arg4: memref<8x128xbf16, #tpu.memory_space<vmem>>, %arg5: memref<8x128xbf16, #tpu.memory_space<vmem>>) attributes {dimension_semantics = [#tpu.dimension_semantics<parallel>], iteration_bounds = array<i64: 4>, scalar_prefetch = 0 : i64, scratch_operands = 0 : i64, tpu.core_type = #tpu.core_type<tc>, window_params = [{transform_indices = @transform_0, window_bounds = array<i64: 8, 32>}, {pipeline_mode = #tpu.pipeline_mode<synchronous>, transform_indices = @transform_1, window_bounds = array<i64: 32, 128>}, {pipeline_mode = #tpu.pipeline_mode<synchronous>, transform_indices = @transform_2, window_bounds = array<i64: 1, 128>}, {transform_indices = @transform_3, window_bounds = array<i64: 8, 128>}, {transform_indices = @transform_4, window_bounds = array<i64: 8, 128>}]} {
    %c0 = arith.constant 0 : index
    %c0_0 = arith.constant 0 : index
    %0 = vector.load %arg1[%c0, %c0_0] : memref<8x32xbf16, #tpu.memory_space<vmem>>, vector<8x32xbf16>
    %c0_1 = arith.constant 0 : index
    %c0_2 = arith.constant 0 : index
    %1 = vector.load %arg2[%c0_1, %c0_2] : memref<32x128xbf16, #tpu.memory_space<vmem>>, vector<32x128xbf16>
    %cst = arith.constant dense<0.000000e+00> : vector<8x128xf32>
    %2 = tpu.matmul %0, %1, %cst {dimension_numbers = #tpu.dot_dimension_numbers<[1], [0], [0], [1], [0, 0, 1, 1], [], []>} : vector<8x32xbf16>, vector<32x128xbf16>, vector<8x128xf32> -> vector<8x128xf32>
    %c0_3 = arith.constant 0 : index
    %c0_4 = arith.constant 0 : index
    %3 = vector.load %arg3[%c0_3, %c0_4] : memref<1x128xf32, #tpu.memory_space<vmem>>, vector<1x128xf32>
    %4 = vector.broadcast %3 : vector<1x128xf32> to vector<8x128xf32>
    %5 = arith.addf %2, %4 : vector<8x128xf32>
    %cst_5 = arith.constant 0.000000e+00 : f32
    %6 = vector.broadcast %cst_5 : f32 to vector<8x128xf32>
    %7 = arith.maximumf %5, %6 : vector<8x128xf32>
    %c0_6 = arith.constant 0 : index
    %c0_7 = arith.constant 0 : index
    %8 = vector.load %arg4[%c0_6, %c0_7] : memref<8x128xbf16, #tpu.memory_space<vmem>>, vector<8x128xbf16>
    %9 = arith.extf %8 : vector<8x128xbf16> to vector<8x128xf32>
    %10 = arith.addf %7, %9 : vector<8x128xf32>
    %11 = arith.truncf %10 : vector<8x128xf32> to vector<8x128xbf16>
    %c0_8 = arith.constant 0 : index
    %c0_9 = arith.constant 0 : index
    %12 = vector.load %arg5[%c0_8, %c0_9] : memref<8x128xbf16, #tpu.memory_space<vmem>>, vector<8x128xbf16>
    tpu.vector_store %arg5[%c0_8, %c0_9], %11 {strides = array<i32>} : memref<8x128xbf16, #tpu.memory_space<vmem>>, vector<8x128xbf16>,
    return
  }
  func.func @transform_0(%arg0: i32) -> (i32, i32) {
    %c0_i32 = arith.constant 0 : i32
    %c0_i32_0 = arith.constant 0 : i32
    return %arg0, %c0_i32 : i32, i32
  }
  func.func @transform_1(%arg0: i32) -> (i32, i32) {
    %c0_i32 = arith.constant 0 : i32
    %c0_i32_0 = arith.constant 0 : i32
    %c0_i32_1 = arith.constant 0 : i32
    return %c0_i32, %c0_i32_0 : i32, i32
  }
  func.func @transform_2(%arg0: i32) -> (i32, i32) {
    %c0_i32 = arith.constant 0 : i32
    %c0_i32_0 = arith.constant 0 : i32
    %c0_i32_1 = arith.constant 0 : i32
    return %c0_i32, %c0_i32_0 : i32, i32
  }
  func.func @transform_3(%arg0: i32) -> (i32, i32) {
    %c0_i32 = arith.constant 0 : i32
    %c0_i32_0 = arith.constant 0 : i32
    return %arg0, %c0_i32 : i32, i32
  }
  func.func @transform_4(%arg0: i32) -> (i32, i32) {
    %c0_i32 = arith.constant 0 : i32
    %c0_i32_0 = arith.constant 0 : i32
    return %arg0, %c0_i32 : i32, i32
  }
}

</mosaic_0001>

<bundles_post_ra>
// kernel: _conv0_call.1
= control target key start
LH: loop header
LB: loop body
LE: loop exit
PB: predicated region body
PF: predicated region fallthrough
CT: control target
= control target key end

     0   :  { %s422_s15 = smov 0   ;;  %s451_s0 = inlined_call_operand.vmem [shape: bf16[32,32], index: 0, kind: input, shape index: {}]   ;;  %s452_s1 = inlined_call_operand.vmem [shape: bf16[32,128], index: 1, kind: input, shape index: {}]   ;;  %s453_s2 = inlined_call_operand.vmem [shape: f32[1,128], index: 2, kind: input, shape index: {}]   ;;  %s454_s3 = inlined_call_operand.vmem [shape: bf16[32,128], index: 3, kind: input, shape index: {}]   ;;  %s455_s4 = inlined_call_operand.vmem [shape: bf16[32,128], index: 4, kind: output, shape index: {}]  }
   0x1 LB: > { %s350_s16 = sadd.s32 4294967295, %s393_s15   ;;  %p354_p0 = scmp.ge.s32.totalorder %s393_s15, 1  ;;  %s393_s15 = sphi %s422_s15, %s14_s15  }
   0x2   : > { %p170_p1 = scmp.lt.s32.totalorder %s393_s15, 5 }
   0x4   : > { %p171_p2 = pnand %p354_p0, %p170_p1 }
   0x5   : > { %v385_v0 = vld [vmem:[%s452_s1] sm:$0xff] (!%p171_p2)   ;;  %v395_v1 = vmov (!%p171_p2), 0.0   ;;  %v386_v2 = vld [vmem:[%s452_s1 + $0x8] sm:$0xff] (!%p171_p2)   ;;  %vm396_vm0 = vmmov (!%p171_p2), 0   ;;  %p198_p3 = scmp.lt.s32.totalorder (!%p171_p2), %s350_s16, 3  ;;  %vm235_vm1 = vcmask (!%p171_p2), 261120  }
   0x6   : > { %174 = sbr.rel (%p171_p2) target bundleno = 238 (0xee), region = 36  ;;  %367 = vmatprep.subr.bf16.mxu0 (!%p171_p2), %v395_v1  ;;  %371 = vmatprep.mubr.msk.bf16.mxu0 (!%p171_p2), %vm396_vm0, %v395_v1  ;;  %v358_v4 = vld [vmem:[%s453_s2] ss:$0 sm:$0xff] (!%p171_p2) }
   0x7   : > { %368 = vmatpush3.bf16.msra.mxu0 (!%p171_p2), %v385_v0 }
   0x8   : > { %369 = vmatprep.subr.bf16.mxu0 (!%p171_p2), %v395_v1 }
   0xb   : > { %370 = vmatpush3.bf16.msra.mxu0 (!%p171_p2), %v386_v2 }
   0xd   : > { %s457_s16 = smov (!%p198_p3, %s350_s16), 3 }
   0xe   : > { %s355_s21 = sshll.u32 %s457_s16, 2 }
   0xf   : > { %s201_s24 = scalar_lea.vmem %s451_s0, %s355_s21  ;;  %s205_s27 = scalar_lea.vmem %s454_s3, %s355_s21 }
  0x10   : > { %v211_v3 = vld [vmem:[%s201_s24] sm:$0xf]  ;;  %s209_s6 = scalar_lea.vmem %s455_s4, %s355_s21 }
  0x11   : > { %372 = vmatmul.mubr.msk.bf16.vlgmr.msra.gmra.mrb[0].mxu0 %vm235_vm1, %v211_v3  ;;  %v280_v5 = vld [vmem:[%s205_s27] sm:$0xf] }
  0x12   : > { %v281_v8 = vunpack.c.l.bf16 %v280_v5 }
  0xe4   : > { %v273_v6 = vpop.f32.mrb[0].mxu0 }
  0xe5   : > { %v274_v7 = vadd.f32 %v358_v4, %v273_v6  ;;  %v373_v9 = vpop.f32.mrb[1].mxu0 }
  0xe6   : > { %v276_v10 = vpop.f32.mrb[2].mxu0 }
  0xe7   : > { %v279_v11 = vmax.f32 %v274_v7, 0.0  ;;  %v374_v12 = vpop.f32.mrb[3].mxu0 }
  0xe9   : > { %v282_v13 = vadd.f32 %v281_v8, %v279_v11 }
  0xeb   : > { %v283_v14 = vpack.c.bf16 %v282_v13, %v282_v13 }
  0xed   : > { %284 = vst [vmem:[%s209_s6] sm:$0xf] %v283_v14 }
  0xee PF: > { %s14_s15 = sadd.s32 1, %s393_s15  }
  0xef   : > { %p11_p4 = scmp.ge.s32.totalorder %s14_s15, 6  }
  0xf1   :  { %13 = sbr.rel (!%p11_p4) target bundleno = 1 (0x1), region = 69 }

</bundles_post_ra>
